<compile_context>
chip_gen: v6e
topology: v6e:2x2x1
jax: 0.10.0
libtpu: 0.0.40
codegen_flags: <defaults>
</compile_context>

<pallas_src>
import functools

import numpy as np
import jax
import jax.numpy as jnp
from jax.experimental import pallas as pl
from jax.experimental.pallas import tpu as pltpu

# ----------------------------- SMPL configuration -----------------------------
NUM_JOINTS = 24                       # SMPL: root + 23 body joints
NUM_BETAS = 10
NUM_VERTS = 128                       # synthetic small mesh (real SMPL: 6890)
BATCH = 2
POSE_FEAT = (NUM_JOINTS - 1) * 9      # 207 (flattened rot mats minus identity)

# standard SMPL kinematic tree (kintree_table[0]); root parent is unused
PARENTS = (-1, 0, 0, 0, 1, 2, 3, 4, 5, 6, 7, 8, 9, 9, 9,
           12, 13, 14, 16, 17, 18, 19, 20, 21)


def _round_up(n, m):
    return ((n + m - 1) // m) * m


def _pick_tile(n, preferred):
    """Largest lane-dense tile (multiple of 128) that divides n and is <= preferred."""
    assert n % 128 == 0, "pad the vertex axis to a 128-multiple first"
    best = 128
    t = 128
    limit = min(n, max(preferred, 128))
    while t <= limit:
        if n % t == 0:
            best = t
        t += 128
    return best


# ------------------------------ Pallas kernels --------------------------------
def _blendshape_kernel(coef_ref, vt_ref, dirs_ref, out_ref):
    """Fused shape+pose blendshapes for one (channel, V-tile) block.

    coef: (B, 217)  bf16  [betas | pose_feature]
    vt:   (1, Tv)   f32   v_template slab (channel-major columns c*Vp + v)
    dirs: (217, Tv) bf16  [shapedirs ; posedirs] slab
    out:  (B, Tv)   f32   v_posed slab for this channel / vertex range
    """
    out_ref[...] = vt_ref[...] + jnp.dot(
        coef_ref[...], dirs_ref[...], preferred_element_type=jnp.float32)


def blendshape(coef, v_template_cv, dirs_cv, *, tile_pref=4096):
    B, K = coef.shape
    V3 = v_template_cv.shape[1]
    V = V3 // 3
    Tv = _pick_tile(V, tile_pref)
    nvb = V // Tv
    return pl.pallas_call(
        _blendshape_kernel,
        out_shape=jax.ShapeDtypeStruct((3, B, V), jnp.float32),
        grid=(3, nvb),
        in_specs=[
            pl.BlockSpec((B, K), lambda c, j: (0, 0)),
            pl.BlockSpec((1, Tv), lambda c, j: (0, c * nvb + j)),
            pl.BlockSpec((K, Tv), lambda c, j: (0, c * nvb + j)),
        ],
        out_specs=pl.BlockSpec((None, B, Tv), lambda c, j: (c, 0, j)),
        compiler_params=pltpu.CompilerParams(
            dimension_semantics=("parallel", "parallel")),
    )(coef, v_template_cv, dirs_cv)


def _skin_kernel(w_ref, a_ref, vp_ref, out_ref, *, batch):
    """Transposed linear-blend skinning for one V tile.

    w:   (J, Tv)   bf16  lbs_weights^T slab
    a:   (12B, J)  bf16  rel transforms, rows ordered (coefficient q, channel c, batch b)
    vp:  (3B, Tv)  f32   v_posed, rows ordered (channel c, batch b)
    out: (3B, Tv)  f32   skinned verts, rows ordered (channel c, batch b)
    """
    b3 = 3 * batch
    # one MXU pass -> coefficient-grouped blocks T0..T3, each (3B, Tv), f32 accumulation
    t = jnp.dot(a_ref[...], w_ref[...], preferred_element_type=jnp.float32)
    t0 = t[0 * b3:1 * b3]
    t1 = t[1 * b3:2 * b3]
    t2 = t[2 * b3:3 * b3]
    t3 = t[3 * b3:4 * b3]
    vp = vp_ref[...]
    vx = vp[0 * batch:1 * batch]                     # (B, Tv) x-channel rows
    vy = vp[1 * batch:2 * batch]
    vz = vp[2 * batch:3 * batch]
    px = jnp.concatenate([vx, vx, vx], axis=0)       # broadcast to all 3 output channels
    py = jnp.concatenate([vy, vy, vy], axis=0)
    pz = jnp.concatenate([vz, vz, vz], axis=0)
    # four full-height, full-lane VPU ops
    out_ref[...] = t0 * px + t1 * py + t2 * pz + t3


def skin(weights_t, a_qcb, vp_rows, *, tile_pref=2048):
    Jn, Vp = weights_t.shape
    B3 = vp_rows.shape[0]
    B = B3 // 3
    # keep >= 2 grid steps when the mesh allows it so v7x megacore can split the axis
    pref = min(tile_pref, Vp // 2) if Vp >= 256 else Vp
    Tv = _pick_tile(Vp, pref)
    kernel = functools.partial(_skin_kernel, batch=B)
    return pl.pallas_call(
        kernel,
        out_shape=jax.ShapeDtypeStruct((B3, Vp), jnp.float32),
        grid=(Vp // Tv,),
        in_specs=[
            pl.BlockSpec((Jn, Tv), lambda v: (0, v)),
            pl.BlockSpec((12 * B, Jn), lambda v: (0, 0)),
            pl.BlockSpec((B3, Tv), lambda v: (0, v)),
        ],
        out_specs=pl.BlockSpec((B3, Tv), lambda v: (0, v)),
        compiler_params=pltpu.CompilerParams(dimension_semantics=("parallel",)),
    )(weights_t, a_qcb, vp_rows)


# ------------------------------- JAX glue (tiny) -------------------------------
def batch_rodrigues(rot_vecs):
    """(N, 3) axis-angle -> (N, 3, 3) rotation matrices (matches humor's lbs)."""
    angle = jnp.linalg.norm(rot_vecs + 1e-8, axis=1, keepdims=True)   # (N, 1)
    rot_dir = rot_vecs / angle
    cos = jnp.cos(angle)[:, None, :]
    sin = jnp.sin(angle)[:, None, :]
    rx, ry, rz = rot_dir[:, 0], rot_dir[:, 1], rot_dir[:, 2]
    zeros = jnp.zeros_like(rx)
    K = jnp.stack([zeros, -rz, ry,
                   rz, zeros, -rx,
                   -ry, rx, zeros], axis=1).reshape(-1, 3, 3)
    ident = jnp.eye(3, dtype=rot_vecs.dtype)[None]
    return ident + sin * K + (1.0 - cos) * jnp.matmul(K, K)


def batch_rigid_transform(rot_mats, joints, parents):
    """rot_mats (B,J,3,3), joints (B,J,3) -> posed_joints (B,J,3), rel A (B,J,4,4)."""
    B, J = joints.shape[:2]
    par = list(parents)
    rel_joints = joints.at[:, 1:].add(-joints[:, jnp.array(par[1:])])
    bottom = jnp.broadcast_to(
        jnp.array([0., 0., 0., 1.], dtype=joints.dtype).reshape(1, 1, 1, 4),
        (B, J, 1, 4))
    tmats = jnp.concatenate(
        [jnp.concatenate([rot_mats, rel_joints[..., None]], axis=-1), bottom],
        axis=-2)                                                      # (B, J, 4, 4)
    chain = [tmats[:, 0]]
    for i in range(1, J):                 # sequential kinematic chain (24 joints)
        chain.append(jnp.matmul(chain[par[i]], tmats[:, i]))
    transforms = jnp.stack(chain, axis=1)                             # (B, J, 4, 4)
    posed_joints = transforms[:, :, :3, 3]
    jh = jnp.concatenate([joints, jnp.zeros((B, J, 1), joints.dtype)],
                         axis=2)[..., None]                           # (B, J, 4, 1)
    rel = transforms - jnp.pad(jnp.matmul(transforms, jh),
                               ((0, 0), (0, 0), (0, 0), (3, 0)))
    return posed_joints, rel


# ------------------------------ BodyModel forward ------------------------------
def body_model_forward(bm, root_orient, pose_body, pose_hand, betas, trans):
    """Mirrors BodyModel.forward for model_type == 'smpl' (no dmpls, no vtx selector)."""
    B = root_orient.shape[0]
    J = NUM_JOINTS
    V = bm["num_verts"]
    Vp = bm["v_template_cv"].shape[1] // 3

    # full_pose = cat([root_orient, pose_body, pose_hand])  -> (B, 72)
    full_pose = jnp.concatenate([root_orient, pose_body, pose_hand], axis=1)
    rot_mats = batch_rodrigues(full_pose.reshape(-1, 3)).reshape(B, J, 3, 3)
    ident = jnp.eye(3, dtype=jnp.float32)
    pose_feature = (rot_mats[:, 1:] - ident).reshape(B, -1)               # (B, 207)
    coef = jnp.concatenate([betas, pose_feature], axis=1).astype(jnp.bfloat16)

    # --- hot path 1: fused shape+pose blendshapes (Pallas, channel-major, lane-dense) ---
    v_posed = blendshape(coef, bm["v_template_cv"], bm["dirs_cv"])        # (3, B, Vp) f32

    # joint regression hoisted out of the kernel: linear in betas, exact f32, tiny
    joints = bm["j_template"][None] + jnp.einsum("bl,jcl->bjc", betas, bm["j_shapedirs"])

    # rigid kinematic chain (tiny, sequential) in plain JAX
    posed_joints, rel = batch_rigid_transform(rot_mats, joints, PARENTS)
    # rel transforms grouped (coefficient q, channel c, batch b) for coefficient-blocked skinning
    a_qcb = rel[:, :, :3, :].transpose(3, 2, 0, 1).reshape(12 * B, J).astype(jnp.bfloat16)

    # --- hot path 2: linear-blend skinning + point transform (Pallas, lane-dense) ---
    vp_rows = v_posed.reshape(3 * B, Vp)                                  # free reshape, rows (c, b)
    verts_rows = skin(bm["weights_t"], a_qcb, vp_rows)                    # (3B, Vp) f32
    verts = verts_rows.reshape(3, B, Vp).transpose(1, 2, 0)[:, :V, :]     # (B, V, 3)

    Jtr = posed_joints + trans[:, None, :]
    verts = verts + trans[:, None, :]

    # TODO(synk): use_vtx_selector / VertexJointSelector, dmpls and smplh/smplx/mano
    #             branches are not implemented (module default path is plain SMPL).
    return {"v": verts, "f": bm["f"], "betas": betas, "Jtr": Jtr,
            "pose_body": pose_body, "full_pose": full_pose}


# -------------------------- pure-JAX reference (check) --------------------------
def reference_forward(master, root_orient, pose_body, pose_hand, betas, trans):
    B = root_orient.shape[0]
    J = NUM_JOINTS
    full_pose = jnp.concatenate([root_orient, pose_body, pose_hand], axis=1)
    rot_mats = batch_rodrigues(full_pose.reshape(-1, 3)).reshape(B, J, 3, 3)
    ident = jnp.eye(3, dtype=jnp.float32)
    pose_feature = (rot_mats[:, 1:] - ident).reshape(B, -1)
    v_shaped = master["v_template"][None] + jnp.einsum(
        "bl,vcl->bvc", betas, master["shapedirs"])
    v_posed = v_shaped + jnp.einsum("bp,vcp->bvc", pose_feature, master["posedirs"])
    joints = jnp.einsum("jv,bvc->bjc", master["J_regressor"], v_shaped)
    posed_joints, rel = batch_rigid_transform(rot_mats, joints, PARENTS)
    T = jnp.einsum("vj,bjpq->bvpq", master["weights"], rel)               # (B, V, 4, 4)
    V = v_posed.shape[1]
    ph = jnp.concatenate([v_posed, jnp.ones((B, V, 1), jnp.float32)], axis=-1)
    verts = jnp.einsum("bvpq,bvq->bvp", T, ph)[..., :3]
    return {"v": verts + trans[:, None, :], "Jtr": posed_joints + trans[:, None, :]}


# ------------------------------------ main --------------------------------------
if __name__ == "__main__":
    key = jax.random.PRNGKey(0)
    ks = jax.random.split(key, 10)
    V, B, J, NB = NUM_VERTS, BATCH, NUM_JOINTS, NUM_BETAS

    # deterministic synthetic SMPL buffers (master copies, standard layout, f32)
    v_template = jax.random.normal(ks[0], (V, 3), jnp.float32) * 0.5
    shapedirs = jax.random.normal(ks[1], (V, 3, NB), jnp.float32) * 0.03
    posedirs_raw = jax.random.normal(ks[2], (V, 3, POSE_FEAT), jnp.float32) * 0.01
    J_regressor = jax.nn.softmax(
        jax.random.normal(ks[3], (J, V), jnp.float32) * 2.0, axis=1)        # (J, V)
    lbs_weights = jax.nn.softmax(
        jax.random.normal(ks[4], (V, J), jnp.float32) * 2.0, axis=1)        # (V, J)
    faces = jnp.stack([jnp.arange(V - 2, dtype=jnp.int32),
                       jnp.arange(1, V - 1, dtype=jnp.int32),
                       jnp.arange(2, V, dtype=jnp.int32)], axis=1)          # (V-2, 3)

    # ---- Pallas-friendly model buffers: V padded to 128-multiple, channel-major ----
    Vp = _round_up(V, 128)
    pad = Vp - V
    v_template_p = jnp.pad(v_template, ((0, pad), (0, 0)))
    shapedirs_p = jnp.pad(shapedirs, ((0, pad), (0, 0), (0, 0)))
    posedirs_p = jnp.pad(posedirs_raw, ((0, pad), (0, 0), (0, 0)))
    lbs_weights_p = jnp.pad(lbs_weights, ((0, pad), (0, 0)))

    v_template_cv = v_template_p.T.reshape(1, 3 * Vp)                       # (1, 3Vp) f32
    dirs_cv = jnp.concatenate(
        [shapedirs_p.transpose(2, 1, 0).reshape(NB, 3 * Vp),
         posedirs_p.transpose(2, 1, 0).reshape(POSE_FEAT, 3 * Vp)],
        axis=0).astype(jnp.bfloat16)                                        # (217, 3Vp) bf16
    weights_t = lbs_weights_p.T.astype(jnp.bfloat16)                        # (J, Vp) bf16

    # fold J_regressor once: joints are linear in betas -> exact f32, computed in plain JAX
    j_template = J_regressor @ v_template                                   # (J, 3)
    j_shapedirs = jnp.einsum("jv,vcl->jcl", J_regressor, shapedirs)         # (J, 3, NB)

    bm = {"v_template_cv": v_template_cv, "dirs_cv": dirs_cv, "weights_t": weights_t,
          "j_template": j_template, "j_shapedirs": j_shapedirs,
          "f": faces, "num_verts": V}
    master = {"v_template": v_template, "shapedirs": shapedirs,
              "posedirs": posedirs_raw, "J_regressor": J_regressor,
              "weights": lbs_weights}

    # forward-pass inputs (the module's nn.Parameters; zeros by default, here nonzero)
    root_orient = jax.random.normal(ks[5], (B, 3), jnp.float32) * 0.2
    pose_body = jax.random.normal(ks[6], (B, 63), jnp.float32) * 0.2
    pose_hand = jax.random.normal(ks[7], (B, 6), jnp.float32) * 0.2
    betas = jax.random.normal(ks[8], (B, NB), jnp.float32)
    trans = jax.random.normal(ks[9], (B, 3), jnp.float32) * 0.1

    forward = jax.jit(functools.partial(body_model_forward, bm))
    out = forward(root_orient, pose_body, pose_hand, betas, trans)
    jax.block_until_ready(out["v"])

    ref = reference_forward(master, root_orient, pose_body, pose_hand, betas, trans)
    assert np.allclose(np.asarray(out["v"]), np.asarray(ref["v"]),
                       rtol=2e-2, atol=2e-2), "verts mismatch"
    assert np.allclose(np.asarray(out["Jtr"]), np.asarray(ref["Jtr"]),
                       rtol=2e-2, atol=2e-2), "joints mismatch"
    assert out["v"].shape == (B, V, 3) and out["Jtr"].shape == (B, J, 3)

    print("KERNEL_OK")
</pallas_src>

<mosaic_0001>
module attributes {stable_mosaic.version = 11 : i64} {
  func.func @_blendshape_kernel(%arg0: i32, %arg1: i32, %arg2: memref<2x217xbf16, #tpu.memory_space<vmem>>, %arg3: memref<1x128xf32, #tpu.memory_space<vmem>>, %arg4: memref<217x128xbf16, #tpu.memory_space<vmem>>, %arg5: memref<1x2x128xf32, #tpu.memory_space<vmem>>) attributes {dimension_semantics = [#tpu.dimension_semantics<parallel>, #tpu.dimension_semantics<parallel>], iteration_bounds = array<i64: 3, 1>, scalar_prefetch = 0 : i64, scratch_operands = 0 : i64, tpu.core_type = #tpu.core_type<tc>, window_params = [{pipeline_mode = #tpu.pipeline_mode<synchronous>, transform_indices = @transform_0, window_bounds = array<i64: 2, 217>}, {transform_indices = @transform_1, window_bounds = array<i64: 1, 128>}, {transform_indices = @transform_2, window_bounds = array<i64: 217, 128>}, {transform_indices = @transform_3, window_bounds = array<i64: 1, 2, 128>}]} {
    %c0 = arith.constant 0 : index
    %c0_0 = arith.constant 0 : index
    %0 = vector.load %arg3[%c0, %c0_0] : memref<1x128xf32, #tpu.memory_space<vmem>>, vector<1x128xf32>
    %c0_1 = arith.constant 0 : index
    %c0_2 = arith.constant 0 : index
    %1 = vector.load %arg2[%c0_1, %c0_2] : memref<2x217xbf16, #tpu.memory_space<vmem>>, vector<2x217xbf16>
    %c0_3 = arith.constant 0 : index
    %c0_4 = arith.constant 0 : index
    %2 = vector.load %arg4[%c0_3, %c0_4] : memref<217x128xbf16, #tpu.memory_space<vmem>>, vector<217x128xbf16>
    %cst = arith.constant dense<0.000000e+00> : vector<2x128xf32>
    %3 = tpu.matmul %1, %2, %cst {dimension_numbers = #tpu.dot_dimension_numbers<[1], [0], [0], [1], [0, 0, 1, 1], [], []>} : vector<2x217xbf16>, vector<217x128xbf16>, vector<2x128xf32> -> vector<2x128xf32>
    %4 = vector.broadcast %0 : vector<1x128xf32> to vector<2x128xf32>
    %5 = arith.addf %4, %3 : vector<2x128xf32>
    %c0_5 = arith.constant 0 : index
    %c0_6 = arith.constant 0 : index
    %c0_7 = arith.constant 0 : index
    %6 = vector.load %arg5[%c0_5, %c0_6, %c0_7] : memref<1x2x128xf32, #tpu.memory_space<vmem>>, vector<1x2x128xf32>
    %7 = vector.shape_cast %6 : vector<1x2x128xf32> to vector<2x128xf32>
    %8 = vector.shape_cast %5 : vector<2x128xf32> to vector<1x2x128xf32>
    tpu.vector_store %arg5[%c0_5, %c0_6, %c0_7], %8 {strides = array<i32>} : memref<1x2x128xf32, #tpu.memory_space<vmem>>, vector<1x2x128xf32>,
    return
  }
  func.func @transform_0(%arg0: i32, %arg1: i32) -> (i32, i32) {
    %c0_i32 = arith.constant 0 : i32
    %c0_i32_0 = arith.constant 0 : i32
    %c0_i32_1 = arith.constant 0 : i32
    return %c0_i32, %c0_i32_0 : i32, i32
  }
  func.func @transform_1(%arg0: i32, %arg1: i32) -> (i32, i32) {
    %c1_i32 = arith.constant 1 : i32
    %0 = arith.muli %arg0, %c1_i32 : i32
    %1 = arith.addi %0, %arg1 : i32
    %c0_i32 = arith.constant 0 : i32
    %c0_i32_0 = arith.constant 0 : i32
    return %c0_i32, %1 : i32, i32
  }
  func.func @transform_2(%arg0: i32, %arg1: i32) -> (i32, i32) {
    %c1_i32 = arith.constant 1 : i32
    %0 = arith.muli %arg0, %c1_i32 : i32
    %1 = arith.addi %0, %arg1 : i32
    %c0_i32 = arith.constant 0 : i32
    %c0_i32_0 = arith.constant 0 : i32
    return %c0_i32, %1 : i32, i32
  }
  func.func @transform_3(%arg0: i32, %arg1: i32) -> (i32, i32, i32) {
    %c0_i32 = arith.constant 0 : i32
    %c0_i32_0 = arith.constant 0 : i32
    return %arg0, %c0_i32, %arg1 : i32, i32, i32
  }
}

module attributes {stable_mosaic.version = 11 : i64} {
  func.func @_skin_kernel(%arg0: i32, %arg1: memref<24x128xbf16, #tpu.memory_space<vmem>>, %arg2: memref<24x24xbf16, #tpu.memory_space<vmem>>, %arg3: memref<6x128xf32, #tpu.memory_space<vmem>>, %arg4: memref<6x128xf32, #tpu.memory_space<vmem>>) attributes {dimension_semantics = [#tpu.dimension_semantics<parallel>], iteration_bounds = array<i64: 1>, scalar_prefetch = 0 : i64, scratch_operands = 0 : i64, tpu.core_type = #tpu.core_type<tc>, window_params = [{transform_indices = @transform_0, window_bounds = array<i64: 24, 128>}, {pipeline_mode = #tpu.pipeline_mode<synchronous>, transform_indices = @transform_1, window_bounds = array<i64: 24, 24>}, {transform_indices = @transform_2, window_bounds = array<i64: 6, 128>}, {transform_indices = @transform_3, window_bounds = array<i64: 6, 128>}]} {
    %c0 = arith.constant 0 : index
    %c0_0 = arith.constant 0 : index
    %0 = vector.load %arg2[%c0, %c0_0] : memref<24x24xbf16, #tpu.memory_space<vmem>>, vector<24x24xbf16>
    %c0_1 = arith.constant 0 : index
    %c0_2 = arith.constant 0 : index
    %1 = vector.load %arg1[%c0_1, %c0_2] : memref<24x128xbf16, #tpu.memory_space<vmem>>, vector<24x128xbf16>
    %cst = arith.constant dense<0.000000e+00> : vector<24x128xf32>
    %2 = tpu.matmul %0, %1, %cst {dimension_numbers = #tpu.dot_dimension_numbers<[1], [0], [0], [1], [0, 0, 1, 1], [], []>} : vector<24x24xbf16>, vector<24x128xbf16>, vector<24x128xf32> -> vector<24x128xf32>
    %3 = vector.extract_strided_slice %2 {offsets = [0, 0], sizes = [6, 128], strides = [1, 1]} : vector<24x128xf32> to vector<6x128xf32>
    %4 = vector.extract_strided_slice %2 {offsets = [6, 0], sizes = [6, 128], strides = [1, 1]} : vector<24x128xf32> to vector<6x128xf32>
    %5 = vector.extract_strided_slice %2 {offsets = [12, 0], sizes = [6, 128], strides = [1, 1]} : vector<24x128xf32> to vector<6x128xf32>
    %6 = vector.extract_strided_slice %2 {offsets = [18, 0], sizes = [6, 128], strides = [1, 1]} : vector<24x128xf32> to vector<6x128xf32>
    %c0_3 = arith.constant 0 : index
    %c0_4 = arith.constant 0 : index
    %7 = vector.load %arg3[%c0_3, %c0_4] : memref<6x128xf32, #tpu.memory_space<vmem>>, vector<6x128xf32>
    %8 = vector.extract_strided_slice %7 {offsets = [0, 0], sizes = [2, 128], strides = [1, 1]} : vector<6x128xf32> to vector<2x128xf32>
    %9 = vector.extract_strided_slice %7 {offsets = [2, 0], sizes = [2, 128], strides = [1, 1]} : vector<6x128xf32> to vector<2x128xf32>
    %10 = vector.extract_strided_slice %7 {offsets = [4, 0], sizes = [2, 128], strides = [1, 1]} : vector<6x128xf32> to vector<2x128xf32>
    %11 = tpu.concatenate %8, %8, %8 in 0 : vector<2x128xf32>, vector<2x128xf32>, vector<2x128xf32> -> vector<6x128xf32>
    %12 = tpu.concatenate %9, %9, %9 in 0 : vector<2x128xf32>, vector<2x128xf32>, vector<2x128xf32> -> vector<6x128xf32>
    %13 = tpu.concatenate %10, %10, %10 in 0 : vector<2x128xf32>, vector<2x128xf32>, vector<2x128xf32> -> vector<6x128xf32>
    %14 = arith.mulf %3, %11 : vector<6x128xf32>
    %15 = arith.mulf %4, %12 : vector<6x128xf32>
    %16 = arith.addf %14, %15 : vector<6x128xf32>
    %17 = arith.mulf %5, %13 : vector<6x128xf32>
    %18 = arith.addf %16, %17 : vector<6x128xf32>
    %19 = arith.addf %18, %6 : vector<6x128xf32>
    %c0_5 = arith.constant 0 : index
    %c0_6 = arith.constant 0 : index
    %20 = vector.load %arg4[%c0_5, %c0_6] : memref<6x128xf32, #tpu.memory_space<vmem>>, vector<6x128xf32>
    tpu.vector_store %arg4[%c0_5, %c0_6], %19 {strides = array<i32>} : memref<6x128xf32, #tpu.memory_space<vmem>>, vector<6x128xf32>,
    return
  }
  func.func @transform_0(%arg0: i32) -> (i32, i32) {
    %c0_i32 = arith.constant 0 : i32
    %c0_i32_0 = arith.constant 0 : i32
    return %c0_i32, %arg0 : i32, i32
  }
  func.func @transform_1(%arg0: i32) -> (i32, i32) {
    %c0_i32 = arith.constant 0 : i32
    %c0_i32_0 = arith.constant 0 : i32
    %c0_i32_1 = arith.constant 0 : i32
    return %c0_i32, %c0_i32_0 : i32, i32
  }
  func.func @transform_2(%arg0: i32) -> (i32, i32) {
    %c0_i32 = arith.constant 0 : i32
    %c0_i32_0 = arith.constant 0 : i32
    return %c0_i32, %arg0 : i32, i32
  }
  func.func @transform_3(%arg0: i32) -> (i32, i32) {
    %c0_i32 = arith.constant 0 : i32
    %c0_i32_0 = arith.constant 0 : i32
    return %c0_i32, %arg0 : i32, i32
  }
}

</mosaic_0001>

<bundles_post_ra>
// kernel: body_model_forward.2
= control target key start
LH: loop header
LB: loop body
LE: loop exit
PB: predicated region body
PF: predicated region fallthrough
CT: control target
= control target key end

     0   :  { %s797_s12 = smov 0   ;;  %s799_s13 = smov 0   ;;  %s945_s0 = inlined_call_operand.vmem [shape: bf16[2,217], index: 0, kind: input, shape index: {}]   ;;  %s946_s1 = inlined_call_operand.vmem [shape: f32[1,384], index: 1, kind: input, shape index: {}]   ;;  %s947_s2 = inlined_call_operand.vmem [shape: bf16[217,384], index: 2, kind: input, shape index: {}]   ;;  %s948_s3 = inlined_call_operand.vmem [shape: f32[3,2,128], index: 3, kind: output, shape index: {}]  }
   0x1   :  { %s801_s14 = smov 0   ;;  %s803_s15 = smov 0  }
   0x2   :  { %s805_s16 = smov 0  }
   0x3 LB: > { %s25_s17 = sadd.s32 1, %s768_s15  ;;  %p90_p1 = scmp.ne.s32.totalorder %s760_s13, %s756_s12  ;;  %s772_s16 = sphi %s805_s16, %s13_s16   ;;  %s768_s15 = sphi %s803_s15, %s952_s15   ;;  %s764_s14 = sphi %s801_s14, %s951_s14   ;;  %s760_s13 = sphi %s799_s13, %s950_s13   ;;  %s756_s12 = sphi %s797_s12, %s949_s12  }
   0x4   : > { %p27_p0 = scmp.ge.s32.totalorder %s25_s17, 3  ;;  %p91_p2 = scmp.eq.s32.totalorder %s772_s16, 0 }
   0x5   : > { %s83_s19 = sadd.s32 1, %s760_s13  ;;  %p652_p5 = scmp.ge.s32.totalorder %s772_s16, 3 }
   0x6   : > { %s954_s17 = smov (%p27_p0, %s25_s17), 0  ;;  %p92_p3 = por %p91_p2, %p90_p1 }
   0x7   : > { %s80_s18 = ssub.s32 %s768_s15, %s954_s17  ;;  %147 = sbr.rel (%p652_p5) target bundleno = 35 (0x23), region = 20 }
   0x8   : > { %p81_p4 = scmp.eq.s32.totalorder %s80_s18, 0 }
   0xa   : > { %s832_s20 = scalar_select %p81_p4, %s760_s13, %s83_s19  }
   0xc   : > { %158 = sbr.rel (!%p92_p3) target bundleno = 35 (0x23), region = 28  ;;  %s160_s21 = sand.u32 (%p92_p3), 1, %s760_s13  }
   0xd   : > { %s653_s22 = sshll.u32 (%p92_p3), %s768_s15, 2  ;;  %s675_s23 = smul.u32 (%p92_p3), 112, %s160_s21 }
   0xe   : > { %s840_s26 = scalar_lea.vmem (%p92_p3), %s947_s2, %s653_s22 }
   0xf   : > { %v182_v0 = vld [vmem:[%s840_s26] sm:$0xf] (%p92_p3)  ;;  %v184_v1 = vld [vmem:[%s840_s26 + $0xc] sm:$0xf] (%p92_p3)  ;;  %v186_v2 = vld [vmem:[%s840_s26 + $0x18] sm:$0xf] (%p92_p3) }
  0x10   : > { %v188_v3 = vld [vmem:[%s840_s26 + $0x24] sm:$0xf] (%p92_p3)  ;;  %v190_v4 = vld [vmem:[%s840_s26 + $0x30] sm:$0xf] (%p92_p3)  ;;  %s847_s27 = scalar_lea.vmem (%p92_p3), [#allocation2], %s675_s23 }
  0x11   : > { %183 = vst [vmem:[%s847_s27] sm:$0xf] %v182_v0  ;;  %185 = vst [vmem:[%s847_s27 + $0x4] sm:$0xf] %v184_v1  ;;  %v192_v5 = vld [vmem:[%s840_s26 + $0x3c] sm:$0xf] }
  0x12   : > { %187 = vst [vmem:[%s847_s27 + $0x8] sm:$0xf] %v186_v2  ;;  %189 = vst [vmem:[%s847_s27 + $0xc] sm:$0xf] %v188_v3  ;;  %v194_v6 = vld [vmem:[%s840_s26 + $0x48] sm:$0xf] }
  0x13   : > { %191 = vst [vmem:[%s847_s27 + $0x10] sm:$0xf] %v190_v4  ;;  %v196_v7 = vld [vmem:[%s840_s26 + $0x54] sm:$0xf]  ;;  %193 = vst [vmem:[%s847_s27 + $0x14] sm:$0xf] %v192_v5 }
  0x14   : > { %195 = vst [vmem:[%s847_s27 + $0x18] sm:$0xf] %v194_v6  ;;  %197 = vst [vmem:[%s847_s27 + $0x1c] sm:$0xf] %v196_v7  ;;  %v198_v8 = vld [vmem:[%s840_s26 + $0x60] sm:$0xf] }
  0x15   : > { %v200_v9 = vld [vmem:[%s840_s26 + $0x6c] sm:$0xf]  ;;  %v202_v10 = vld [vmem:[%s840_s26 + $0x78] sm:$0xf]  ;;  %199 = vst [vmem:[%s847_s27 + $0x20] sm:$0xf] %v198_v8 }
  0x16   : > { %201 = vst [vmem:[%s847_s27 + $0x24] sm:$0xf] %v200_v9  ;;  %203 = vst [vmem:[%s847_s27 + $0x28] sm:$0xf] %v202_v10  ;;  %v204_v11 = vld [vmem:[%s840_s26 + $0x84] sm:$0xf] }
  0x17   : > { %v206_v12 = vld [vmem:[%s840_s26 + $0x90] sm:$0xf]  ;;  %v208_v13 = vld [vmem:[%s840_s26 + $0x9c] sm:$0xf]  ;;  %205 = vst [vmem:[%s847_s27 + $0x2c] sm:$0xf] %v204_v11 }
  0x18   : > { %207 = vst [vmem:[%s847_s27 + $0x30] sm:$0xf] %v206_v12  ;;  %209 = vst [vmem:[%s847_s27 + $0x34] sm:$0xf] %v208_v13  ;;  %v210_v14 = vld [vmem:[%s840_s26 + $0xa8] sm:$0xf] }
  0x19   : > { %v212_v15 = vld [vmem:[%s840_s26 + $0xb4] sm:$0xf]  ;;  %v214_v16 = vld [vmem:[%s840_s26 + $0xc0] sm:$0xf]  ;;  %211 = vst [vmem:[%s847_s27 + $0x38] sm:$0xf] %v210_v14 }
  0x1a   : > { %213 = vst [vmem:[%s847_s27 + $0x3c] sm:$0xf] %v212_v15  ;;  %215 = vst [vmem:[%s847_s27 + $0x40] sm:$0xf] %v214_v16  ;;  %v216_v17 = vld [vmem:[%s840_s26 + $0xcc] sm:$0xf] }
  0x1b   : > { %v218_v18 = vld [vmem:[%s840_s26 + $0xd8] sm:$0xf]  ;;  %v220_v19 = vld [vmem:[%s840_s26 + $0xe4] sm:$0xf]  ;;  %217 = vst [vmem:[%s847_s27 + $0x44] sm:$0xf] %v216_v17 }
  0x1c   : > { %219 = vst [vmem:[%s847_s27 + $0x48] sm:$0xf] %v218_v18  ;;  %221 = vst [vmem:[%s847_s27 + $0x4c] sm:$0xf] %v220_v19  ;;  %v222_v20 = vld [vmem:[%s840_s26 + $0xf0] sm:$0xf] }
  0x1d   : > { %v224_v21 = vld [vmem:[%s840_s26 + $0xfc] sm:$0xf]  ;;  %v226_v22 = vld [vmem:[%s840_s26 + $0x108] sm:$0xf]  ;;  %223 = vst [vmem:[%s847_s27 + $0x50] sm:$0xf] %v222_v20 }
  0x1e   : > { %225 = vst [vmem:[%s847_s27 + $0x54] sm:$0xf] %v224_v21  ;;  %227 = vst [vmem:[%s847_s27 + $0x58] sm:$0xf] %v226_v22  ;;  %v228_v23 = vld [vmem:[%s840_s26 + $0x114] sm:$0xf] }
  0x1f   : > { %v230_v24 = vld [vmem:[%s840_s26 + $0x120] sm:$0xf]  ;;  %v232_v25 = vld [vmem:[%s840_s26 + $0x12c] sm:$0xf]  ;;  %229 = vst [vmem:[%s847_s27 + $0x5c] sm:$0xf] %v228_v23 }
  0x20   : > { %231 = vst [vmem:[%s847_s27 + $0x60] sm:$0xf] %v230_v24  ;;  %233 = vst [vmem:[%s847_s27 + $0x64] sm:$0xf] %v232_v25  ;;  %v234_v26 = vld [vmem:[%s840_s26 + $0x138] sm:$0xf] }
  0x21   : > { %v236_v27 = vld [vmem:[%s840_s26 + $0x144] sm:$0xf]  ;;  %235 = vst [vmem:[%s847_s27 + $0x68] sm:$0xf] %v234_v26 }
  0x22   : > { %237 = vst [vmem:[%s847_s27 + $0x6c] sm:$0xf] %v236_v27 }
  0x23 PF: > { %p654_p6 = scmp.ge.s32.totalorder %s772_s16, 1  ;;  %p316_p7 = scmp.lt.s32.totalorder %s772_s16, 4 }
  0x25   : > { %p317_p8 = pnand %p654_p6, %p316_p7 }
  0x26   : > { %s323_s28 = sand.u32 (!%p317_p8), 1, %s756_s12   ;;  %p353_p9 = scmp.lt.s32.totalorder (!%p317_p8), %s764_s14, 2 }
  0x27   : > { %320 = sbr.rel (%p317_p8) target bundleno = 300 (0x12c), region = 69 }
  0x28   : > { %s676_s29 = smul.u32 (!%p317_p8), 112, %s323_s28 }
  0x2a   : > { %s906_s5 = scalar_lea.vmem (!%p317_p8), [#allocation2], %s676_s29 }
  0x2c   : > { %v774_v28 = vmov 0   ;;  %v408_v29 = vlaneseq  ;;  %v656_v30 = vld.sshfl [vmem:[%s945_s0] sm:$0x11 pattern:$0x75316420]  ;;  %v720_v34 = vld [vmem:[%s906_s5 + $0x38] sm:$0xff]  }
  0x2d   : > { %514 = vmatprep.subr.bf16.mxu0 %v774_v28  ;;  %v775_v31 = vmov 1966171168   ;;  %v404_v35 = vcombine.high %v656_v30, %v656_v30  ;;  %v721_v37 = vld [vmem:[%s906_s5 + $0x30] sm:$0xff]   ;;  %vm503_vm0 = vcmask 728064   ;;  %v722_v40 = vld [vmem:[%s906_s5 + $0x28] sm:$0xff]   ;;  %v723_v41 = vld [vmem:[%s906_s5 + $0x20] sm:$0xff]  }
  0x2e   : > { %v406_v32 = vunpack.c.l.s4 %v775_v31  ;;  %v409_v33 = vshrl.u32 %v408_v29, 7  ;;  %515 = vmatpush1.bf16.msra.mxu0 %v720_v34  ;;  %v724_v42 = vld [vmem:[%s906_s5 + $0x18] sm:$0xff]   ;;  %v725_v43 = vld [vmem:[%s906_s5 + $0x10] sm:$0xff]   ;;  %vm507_vm1 = vcmask 1043456   ;;  %v726_v44 = vld [vmem:[%s906_s5 + $0x8] sm:$0xff]   ;;  %vm508_vm2 = vcmask 1044480  }
  0x2f   : > { %516 = vmatprep.subr.bf16.mxu0 %v774_v28  ;;  %v776_v45 = vmov 65535   ;;  %v727_v47 = vld [vmem:[%s906_s5] sm:$0xff]   ;;  %v728_v48 = vld [vmem:[%s906_s5 + $0x68] sm:$0x1f]   ;;  %v730_v52 = vld [vmem:[%s906_s5 + $0x58] sm:$0xff]   ;;  %s956_s14 = smov (!%p353_p9, %s764_s14), 2 }
  0x30   : > { %v407_v36 = vunpack.c.0.s8 %v406_v32  ;;  %v509_v46 = vsel %vm507_vm1, 4294967295, %v776_v45  ;;  %v729_v51 = vld [vmem:[%s906_s5 + $0x60] sm:$0xff]   ;;  %v731_v53 = vld [vmem:[%s906_s5 + $0x50] sm:$0xff]   ;;  %v732_v54 = vld [vmem:[%s906_s5 + $0x48] sm:$0xff]   ;;  %s355_s8 = scalar_lea.vmem %s946_s1, %s956_s14  ;;  %s655_s9 = sshll.u32 %s956_s14, 1 }
  0x31   : > { %v510_v49 = vsel %vm508_vm2, %v509_v46, 0  ;;  %v733_v55 = vld [vmem:[%s906_s5 + $0x40] sm:$0xff]   ;;  %s364_s12 = scalar_lea.vmem %s948_s3, %s655_s9 }
  0x32   : > { %v410_v38 = vsub.s32 %v407_v36, %v409_v33  ;;  %517 = vmatpush1.bf16.msra.mxu0 %v721_v37  ;;  %v512_v50 = vand.u32 %v728_v48, %v510_v49  ;;  %v672_v57 = vld [vmem:[%s355_s8] ss:$0 sm:$0xff] }
  0x33   : > { %518 = vmatprep.subr.bf16.mxu0 %v774_v28 }
  0x34   : > { %v418_v39 = vrot.slane %v404_v35, %v410_v38  ;;  %v411_v56 = vrot.slane %v656_v30, %v410_v38 }
  0x36   : > { %671 = vmatprep.mubr.msk.bf16.mxu0 %vm503_vm0, %v418_v39  ;;  %519 = vmatpush1.bf16.msra.mxu0 %v722_v40 }
  0x37   : > { %520 = vmatprep.subr.bf16.mxu0 %v774_v28 }
  0x3a   : > { %521 = vmatpush1.bf16.msra.mxu0 %v723_v41 }
  0x3b   : > { %522 = vmatprep.subr.bf16.mxu0 %v774_v28 }
  0x3e   : > { %523 = vmatpush1.bf16.msra.mxu0 %v724_v42 }
  0x3f   : > { %524 = vmatprep.subr.bf16.mxu0 %v774_v28 }
  0x42   : > { %525 = vmatpush1.bf16.msra.mxu0 %v725_v43 }
  0x43   : > { %526 = vmatprep.subr.bf16.mxu0 %v774_v28 }
  0x46   : > { %527 = vmatpush1.bf16.msra.mxu0 %v726_v44 }
  0x47   : > { %528 = vmatprep.subr.bf16.mxu0 %v774_v28 }
  0x4a   : > { %529 = vmatpush1.bf16.msra.mxu0 %v727_v47 }
  0x4b   : > { %534 = vmatprep.subr.bf16.mxu0 %v774_v28 }
  0x4e   : > { %535 = vmatpush2.bf16.msra.mxu0 %v512_v50 }
  0x4f   : > { %536 = vmatprep.subr.bf16.mxu0 %v774_v28 }
  0x52   : > { %537 = vmatpush2.bf16.msra.mxu0 %v729_v51 }
  0x53   : > { %538 = vmatprep.subr.bf16.mxu0 %v774_v28 }
  0x56   : > { %539 = vmatpush2.bf16.msra.mxu0 %v730_v52 }
  0x57   : > { %540 = vmatprep.subr.bf16.mxu0 %v774_v28 }
  0x5a   : > { %541 = vmatpush2.bf16.msra.mxu0 %v731_v53 }
  0x5b   : > { %542 = vmatprep.subr.bf16.mxu0 %v774_v28 }
  0x5e   : > { %543 = vmatpush2.bf16.msra.mxu0 %v732_v54 }
  0x5f   : > { %544 = vmatprep.subr.bf16.mxu0 %v774_v28 }
  0x62   : > { %545 = vmatpush2.bf16.msra.mxu0 %v733_v55 }
  0x65   : > { %547 = vmatmul.mubr.bf16.vlgmr.msra.gmra.mxu0 %v411_v56 }
 0x125   : > { %v548_v58 = vpop.f32.mrf.mxu0 }
 0x126   : > { %v560_v59 = vadd.f32 %v672_v57, %v548_v58 }
 0x127   : > { %v550_v60 = vpop.f32.mrf.mxu0 }
 0x128   : > { %561 = vst [vmem:[%s364_s12] sm:$0x3] %v560_v59 }
 0x129   : > { %v551_v61 = vpop.f32.mrf.mxu0 }
 0x12b   : > { %v552_v62 = vpop.f32.mrf.mxu0 }
 0x12c PF: > { %s13_s16 = sadd.s32 1, %s772_s16   ;;  %s949_s12 = smov %s760_s13 }
 0x12d   : > { %p10_p10 = scmp.ge.s32.totalorder %s13_s16, 5   ;;  %s950_s13 = smov %s832_s20 }
 0x12e   : > { %s951_s14 = smov %s768_s15  ;;  %s952_s15 = smov %s954_s17 }
 0x12f   :  { %12 = sbr.rel (!%p10_p10) target bundleno = 3 (0x3), region = 111 }

// kernel: body_model_forward.3
= control target key start
LH: loop header
LB: loop body
LE: loop exit
PB: predicated region body
PF: predicated region fallthrough
CT: control target
= control target key end

     0   :  { %vm45_vm0 = vcmask 1043456   ;;  %vm38_vm1 = vcmask 195584   ;;  %vm103_vm2 = vcmask 1041408   ;;  %s217_s0 = inlined_call_operand.vmem [shape: bf16[24,128], index: 0, kind: input, shape index: {}]   ;;  %s218_s1 = inlined_call_operand.vmem [shape: bf16[24,24], index: 1, kind: input, shape index: {}]   ;;  %s219_s2 = inlined_call_operand.vmem [shape: f32[6,128], index: 2, kind: input, shape index: {}]   ;;  %s220_s3 = inlined_call_operand.vmem [shape: f32[6,128], index: 3, kind: output, shape index: {}]  }
   0x1   :  { %v165_v0 = vld [vmem:[%s217_s0 + $0x8] ss:$0 sps:$4 sm:$0xff]   ;;  %v166_v1 = vld [vmem:[%s217_s0] sm:$0xff]  }
   0x2   :  { %164 = vmatprep.subr.msk.bf16.mxu0 %vm45_vm0, %v165_v0  ;;  %v47_v2 = vsel %vm45_vm0, %v165_v0, 0  ;;  %v167_v3 = vld [vmem:[%s218_s1] sm:$0xff]   ;;  %v168_v4 = vld [vmem:[%s218_s1 + $0x8] ss:$0 sps:$4 sm:$0xff]  }
   0x3   :  { %157 = vmatpush3.bf16.msra.mxu0 %v47_v2  ;;  %160 = vmatprep.mubr.msk.bf16.mxu0 %vm38_vm1, %v167_v3  ;;  %v97_v5 = vld [vmem:[%s219_s2] sm:$0x3f] }
   0x4   :  { %158 = vmatprep.subr.bf16.mxu0 %v166_v1  ;;  %v101_v6 = vrot.slane %v97_v5, 4  ;;  %v106_v7 = vrot.slane %v97_v5, 2  ;;  %v99_v8 = vrot.slane %v97_v5, 6 }
   0x6   :  { %v108_v9 = vsel %vm103_vm2, %v106_v7, %v97_v5  ;;  %v110_v10 = vsel %vm103_vm2, %v101_v6, %v106_v7  ;;  %v104_v17 = vsel %vm103_vm2, %v97_v5, %v99_v8 }
   0x7   :  { %159 = vmatpush3.bf16.msra.mxu0 %v166_v1  ;;  %v109_v11 = vsel %vm45_vm0, %v108_v9, %v99_v8  ;;  %v111_v13 = vsel %vm45_vm0, %v110_v10, %v97_v5  ;;  %v105_v22 = vsel %vm45_vm0, %v104_v17, %v101_v6 }
   0x8   :  { %v114_v14 = vrot.slane %v109_v11, 2  ;;  %v126_v16 = vrot.slane %v111_v13, 4 }
   0xa   :  { %161 = vmatmul.mubr.msk.bf16.vlgmr.msra.gmra.mxu0 %vm38_vm1, %v168_v4 }
  0xca   :  { %v162_v12 = vpop.f32.mrf.mxu0 }
  0xcb   :  { %v129_v21 = vmul.f32 %v162_v12, %v126_v16  ;;  %v138_v33 = vrot.slane %v162_v12, 2 }
  0xcc   :  { %v83_v15 = vpop.f32.mrf.mxu0 }
  0xcd   :  { %v116_v19 = vmul.f32 %v114_v14, %v83_v15  ;;  %v112_v28 = vmul.f32 %v105_v22, %v83_v15  ;;  %v133_v29 = vrot.slane %v129_v21, 4 }
  0xce   :  { %v163_v18 = vpop.f32.mrf.mxu0 }
  0xcf   :  { %v120_v25 = vrot.slane %v116_v19, 6 }
  0xd0   :  { %v86_v20 = vpop.f32.mrf.mxu0 }
  0xd1   :  { %v117_v23 = vmul.f32 %v114_v14, %v86_v20  ;;  %v128_v24 = vmul.f32 %v126_v16, %v86_v20 }
  0xd3   :  { %v121_v26 = vrot.slane %v117_v23, 6  ;;  %v132_v27 = vrot.slane %v128_v24, 4 }
  0xd5   :  { %v122_v30 = vsel %vm103_vm2, %v120_v25, %v121_v26  ;;  %v134_v32 = vsel %vm45_vm0, %v132_v27, %v133_v29 }
  0xd6   :  { %v124_v31 = vadd.f32 %v122_v30, %v112_v28 }
  0xd8   :  { %v136_v34 = vadd.f32 %v134_v32, %v124_v31 }
  0xda   :  { %v140_v35 = vadd.f32 %v138_v33, %v136_v34 }
  0xdc   :  { %141 = vst [vmem:[%s220_s3] sm:$0x3f] %v140_v35 }

</bundles_post_ra>
